<compile_context>
chip_gen: v5e
topology: v5e:2x2
jax: 0.10.0
libtpu: 0.0.40
codegen_flags: <defaults>
</compile_context>

<pallas_src>
import functools

import jax
import jax.numpy as jnp
from jax.experimental import pallas as pl
from jax.experimental.pallas import tpu as pltpu

C_OUT = 16
KH, KW = 3, 7
NEG_SLOPE = 0.2


def conv_leaky_kernel(w_ref, col_ref, xc_ref, xn_ref, o_ref, *, width):
    """One lane tile of the flattened per-batch spatial axis per grid step.

    w_ref  : (16, 22)  conv taps + bias column (VMEM resident across the grid)
    col_ref: (1, T)    width index (p mod W) of each output column in the tile
    xc_ref : (1, T)    flat H-padded input slab covering this tile's columns
    xn_ref : (1, Th)   halo: first Th elements of the next tile's slab
    o_ref  : (16, T)   conv + LeakyReLU(0.2), lane-dense
    """
    tile = xc_ref.shape[-1]
    full = jnp.concatenate([xc_ref[...], xn_ref[...]], axis=1)    # (1, T + Th)
    total = full.shape[-1]
    col = col_ref[...]                                            # (1, T) int32

    # Build the (22, T) patch matrix in VMEM: 21 shifted + masked tap rows
    # (XLU roll + VPU select, no extra HBM traffic) plus a ones row (bias).
    rows = []
    for kh in range(KH):
        for kw in range(KW):
            off = kh * width + kw          # static flat offset of this tap
            dw = kw - KW // 2              # signed width shift of this tap
            shifted = full if off == 0 else pltpu.roll(
                full, shift=total - off, axis=1)
            vals = shifted[:, :tile]       # aligned static slice
            # Zero lanes whose width index falls outside [0, W) after the dw
            # shift ('same' padding along W); H padding is already in the slab.
            mask = (col >= -dw) & (col < width - dw)
            rows.append(jnp.where(mask, vals, 0.0))
    rows.append(jnp.ones_like(rows[0]))                           # bias row
    patches = jnp.concatenate(rows, axis=0)                       # (22, T)

    acc = jnp.dot(w_ref[...], patches,
                  preferred_element_type=jnp.float32)             # MXU (16, T)
    out = jnp.where(acc >= 0.0, acc, NEG_SLOPE * acc)              # LeakyReLU
    o_ref[...] = out.astype(o_ref.dtype)


def _pick_max_tile():
    """Lane-tile cap: bigger on v7x (3.2 TB/s HBM); detect it by its 64 MiB VMEM."""
    try:
        info = pltpu.get_tpu_info()
        vmem = getattr(info, "vmem_capacity_bytes", None)
        if vmem is not None and vmem <= 80 * 1024 * 1024:
            return 32768
    except Exception:
        pass
    return 16384


def random_cnn_content(x, w, b):
    """x: (N, 1, H, W) f32; w: (16, 1, 3, 7); b: (16,) -> (N, 16, H, W)."""
    N, C, H, W = x.shape
    assert C == 1, "RandomCNNContent expects a single input channel"
    HW = H * W
    K1 = KH * KW + 1                       # 21 conv taps + 1 bias row

    # ---- lane tiling -----------------------------------------------------
    max_tile = _pick_max_tile()
    # Halo chunk: smallest 128-multiple covering the largest tap offset 2W+6.
    halo = 128 * pl.cdiv(2 * W + (KW - 1), 128)
    tile = max(halo, min(max_tile, 128 * pl.cdiv(HW, 128)))
    tile = halo * pl.cdiv(tile, halo)      # halo must divide tile (block math)
    ntiles = pl.cdiv(HW, tile)
    flat_len = (ntiles + 1) * tile         # padded flat input length per batch

    # ---- wrapper-side prep (one input-sized pass, no im2col) --------------
    # 'same' padding along H only; width edges handled by in-kernel masks.
    xpad = jnp.pad(x[:, 0], ((0, 0), (KH // 2, KH // 2), (0, 0)))  # (N, H+2, W)
    xflat = xpad.reshape(N, 1, (H + KH - 1) * W)
    xflat = jnp.pad(xflat, ((0, 0), (0, 0),
                            (KW // 2,
                             flat_len - (H + KH - 1) * W - KW // 2)))
    # Per-output-column width index (p mod W), reused by every batch element.
    col = (jnp.arange(ntiles * tile, dtype=jnp.int32) % W).reshape(1, -1)
    # Conv taps with the bias folded in as a last column: (16, 22).
    wb = jnp.concatenate([w[:, 0].reshape(C_OUT, KH * KW),
                          b.reshape(C_OUT, 1).astype(w.dtype)], axis=1)

    kernel = functools.partial(conv_leaky_kernel, width=W)

    flops = 2 * C_OUT * K1 * N * HW
    bytes_accessed = 4 * (xflat.size + col.size + wb.size + N * C_OUT * HW)

    out = pl.pallas_call(
        kernel,
        out_shape=jax.ShapeDtypeStruct((N, C_OUT, HW), x.dtype),
        grid=(N, ntiles),
        in_specs=[
            pl.BlockSpec((C_OUT, K1), lambda n, t: (0, 0)),      # weights, resident
            pl.BlockSpec((1, tile), lambda n, t: (0, t)),        # width-index map
            pl.BlockSpec((None, 1, tile),
                         lambda n, t: (n, 0, t)),                # current tile
            pl.BlockSpec((None, 1, halo),
                         lambda n, t: (n, 0, (t + 1) * (tile // halo))),  # halo
        ],
        out_specs=pl.BlockSpec((None, C_OUT, tile),
                               lambda n, t: (n, 0, t)),          # lane-dense out
        compiler_params=pltpu.CompilerParams(
            dimension_semantics=("parallel", "parallel"),
            vmem_limit_bytes=48 * 1024 * 1024),
        cost_estimate=pl.CostEstimate(flops=flops, transcendentals=0,
                                      bytes_accessed=bytes_accessed),
    )(wb, col, xflat, xflat)

    # (N, 16, H*W) -> (N, 16, H, W): metadata-only reshape, no transpose pass.
    return out.reshape(N, C_OUT, H, W)


if __name__ == "__main__":
    key = jax.random.PRNGKey(0)
    kx, kw_, kb = jax.random.split(key, 3)

    # Small deterministic shapes: batch=2, 1 input channel, 16x16 spatial.
    N, H, W = 2, 16, 16
    x = jax.random.normal(kx, (N, 1, H, W), dtype=jnp.float32)

    # Deterministic synthetic parameters (Conv2d(1, 16, (3, 7)) shapes).
    w = jax.random.normal(kw_, (C_OUT, 1, KH, KW), dtype=jnp.float32) * 0.1
    b = jax.random.normal(kb, (C_OUT,), dtype=jnp.float32) * 0.1

    out = jax.block_until_ready(random_cnn_content(x, w, b))

    # Pure-JAX reference (same semantics as the PyTorch module) for sanity.
    ref = jax.lax.conv_general_dilated(
        x, w, window_strides=(1, 1), padding="SAME",
        dimension_numbers=("NCHW", "OIHW", "NCHW"),
        precision=jax.lax.Precision.HIGHEST)
    ref = ref + b.reshape(1, C_OUT, 1, 1)
    ref = jnp.where(ref >= 0.0, ref, NEG_SLOPE * ref)

    assert out.shape == (N, C_OUT, H, W)
    # 1e-2 tolerance documented: the in-kernel dot uses default TPU matmul
    # precision vs. the Precision.HIGHEST reference.
    assert jnp.allclose(out, ref, atol=1e-2, rtol=1e-2), "mismatch vs reference"
    print("KERNEL_OK")
</pallas_src>

<mosaic_0001>
module attributes {stable_mosaic.version = 11 : i64} {
  func.func @conv_leaky_kernel(%arg0: i32, %arg1: i32, %arg2: memref<16x22xf32, #tpu.memory_space<vmem>>, %arg3: memref<1x256xi32, #tpu.memory_space<vmem>>, %arg4: memref<1x1x256xf32, #tpu.memory_space<vmem>>, %arg5: memref<1x1x128xf32, #tpu.memory_space<vmem>>, %arg6: memref<1x16x256xf32, #tpu.memory_space<vmem>>) attributes {dimension_semantics = [#tpu.dimension_semantics<parallel>, #tpu.dimension_semantics<parallel>], iteration_bounds = array<i64: 2, 1>, scalar_prefetch = 0 : i64, scratch_operands = 0 : i64, tpu.core_type = #tpu.core_type<tc>, window_params = [{pipeline_mode = #tpu.pipeline_mode<synchronous>, transform_indices = @transform_0, window_bounds = array<i64: 16, 22>}, {transform_indices = @transform_1, window_bounds = array<i64: 1, 256>}, {transform_indices = @transform_2, window_bounds = array<i64: 1, 1, 256>}, {transform_indices = @transform_3, window_bounds = array<i64: 1, 1, 128>}, {transform_indices = @transform_4, window_bounds = array<i64: 1, 16, 256>}]} {
    %c0 = arith.constant 0 : index
    %c0_0 = arith.constant 0 : index
    %c0_1 = arith.constant 0 : index
    %0 = vector.load %arg4[%c0, %c0_0, %c0_1] : memref<1x1x256xf32, #tpu.memory_space<vmem>>, vector<1x1x256xf32>
    %1 = vector.shape_cast %0 : vector<1x1x256xf32> to vector<1x256xf32>
    %c0_2 = arith.constant 0 : index
    %c0_3 = arith.constant 0 : index
    %c0_4 = arith.constant 0 : index
    %2 = vector.load %arg5[%c0_2, %c0_3, %c0_4] : memref<1x1x128xf32, #tpu.memory_space<vmem>>, vector<1x1x128xf32>
    %3 = vector.shape_cast %2 : vector<1x1x128xf32> to vector<1x128xf32>
    %4 = tpu.concatenate %1, %3 in 1 : vector<1x256xf32>, vector<1x128xf32> -> vector<1x384xf32>
    %c0_5 = arith.constant 0 : index
    %c0_6 = arith.constant 0 : index
    %5 = vector.load %arg3[%c0_5, %c0_6] : memref<1x256xi32, #tpu.memory_space<vmem>>, vector<1x256xi32>
    %6 = vector.extract_strided_slice %4 {offsets = [0, 0], sizes = [1, 256], strides = [1, 1]} : vector<1x384xf32> to vector<1x256xf32>
    %c3_i32 = arith.constant 3 : i32
    %7 = vector.broadcast %c3_i32 : i32 to vector<1x256xi32>
    %8 = arith.cmpi sge, %5, %7 : vector<1x256xi32>
    %c19_i32 = arith.constant 19 : i32
    %9 = vector.broadcast %c19_i32 : i32 to vector<1x256xi32>
    %10 = arith.cmpi slt, %5, %9 : vector<1x256xi32>
    %11 = arith.andi %8, %10 : vector<1x256xi1>
    %cst = arith.constant 0.000000e+00 : f32
    %12 = vector.broadcast %cst : f32 to vector<1x256xf32>
    %13 = arith.select %11, %6, %12 : vector<1x256xi1>, vector<1x256xf32>
    %c383_i32 = arith.constant 383 : i32
    %14 = tpu.dynamic_rotate %4 by %c383_i32 dim 1 : vector<1x384xf32>, i32 -> vector<1x384xf32>
    %15 = vector.extract_strided_slice %14 {offsets = [0, 0], sizes = [1, 256], strides = [1, 1]} : vector<1x384xf32> to vector<1x256xf32>
    %c2_i32 = arith.constant 2 : i32
    %16 = vector.broadcast %c2_i32 : i32 to vector<1x256xi32>
    %17 = arith.cmpi sge, %5, %16 : vector<1x256xi32>
    %c18_i32 = arith.constant 18 : i32
    %18 = vector.broadcast %c18_i32 : i32 to vector<1x256xi32>
    %19 = arith.cmpi slt, %5, %18 : vector<1x256xi32>
    %20 = arith.andi %17, %19 : vector<1x256xi1>
    %cst_7 = arith.constant 0.000000e+00 : f32
    %21 = vector.broadcast %cst_7 : f32 to vector<1x256xf32>
    %22 = arith.select %20, %15, %21 : vector<1x256xi1>, vector<1x256xf32>
    %c382_i32 = arith.constant 382 : i32
    %23 = tpu.dynamic_rotate %4 by %c382_i32 dim 1 : vector<1x384xf32>, i32 -> vector<1x384xf32>
    %24 = vector.extract_strided_slice %23 {offsets = [0, 0], sizes = [1, 256], strides = [1, 1]} : vector<1x384xf32> to vector<1x256xf32>
    %c1_i32 = arith.constant 1 : i32
    %25 = vector.broadcast %c1_i32 : i32 to vector<1x256xi32>
    %26 = arith.cmpi sge, %5, %25 : vector<1x256xi32>
    %c17_i32 = arith.constant 17 : i32
    %27 = vector.broadcast %c17_i32 : i32 to vector<1x256xi32>
    %28 = arith.cmpi slt, %5, %27 : vector<1x256xi32>
    %29 = arith.andi %26, %28 : vector<1x256xi1>
    %cst_8 = arith.constant 0.000000e+00 : f32
    %30 = vector.broadcast %cst_8 : f32 to vector<1x256xf32>
    %31 = arith.select %29, %24, %30 : vector<1x256xi1>, vector<1x256xf32>
    %c381_i32 = arith.constant 381 : i32
    %32 = tpu.dynamic_rotate %4 by %c381_i32 dim 1 : vector<1x384xf32>, i32 -> vector<1x384xf32>
    %33 = vector.extract_strided_slice %32 {offsets = [0, 0], sizes = [1, 256], strides = [1, 1]} : vector<1x384xf32> to vector<1x256xf32>
    %c0_i32 = arith.constant 0 : i32
    %34 = vector.broadcast %c0_i32 : i32 to vector<1x256xi32>
    %35 = arith.cmpi sge, %5, %34 : vector<1x256xi32>
    %c16_i32 = arith.constant 16 : i32
    %36 = vector.broadcast %c16_i32 : i32 to vector<1x256xi32>
    %37 = arith.cmpi slt, %5, %36 : vector<1x256xi32>
    %38 = arith.andi %35, %37 : vector<1x256xi1>
    %cst_9 = arith.constant 0.000000e+00 : f32
    %39 = vector.broadcast %cst_9 : f32 to vector<1x256xf32>
    %40 = arith.select %38, %33, %39 : vector<1x256xi1>, vector<1x256xf32>
    %c380_i32 = arith.constant 380 : i32
    %41 = tpu.dynamic_rotate %4 by %c380_i32 dim 1 : vector<1x384xf32>, i32 -> vector<1x384xf32>
    %42 = vector.extract_strided_slice %41 {offsets = [0, 0], sizes = [1, 256], strides = [1, 1]} : vector<1x384xf32> to vector<1x256xf32>
    %c-1_i32 = arith.constant -1 : i32
    %43 = vector.broadcast %c-1_i32 : i32 to vector<1x256xi32>
    %44 = arith.cmpi sge, %5, %43 : vector<1x256xi32>
    %c15_i32 = arith.constant 15 : i32
    %45 = vector.broadcast %c15_i32 : i32 to vector<1x256xi32>
    %46 = arith.cmpi slt, %5, %45 : vector<1x256xi32>
    %47 = arith.andi %44, %46 : vector<1x256xi1>
    %cst_10 = arith.constant 0.000000e+00 : f32
    %48 = vector.broadcast %cst_10 : f32 to vector<1x256xf32>
    %49 = arith.select %47, %42, %48 : vector<1x256xi1>, vector<1x256xf32>
    %c379_i32 = arith.constant 379 : i32
    %50 = tpu.dynamic_rotate %4 by %c379_i32 dim 1 : vector<1x384xf32>, i32 -> vector<1x384xf32>
    %51 = vector.extract_strided_slice %50 {offsets = [0, 0], sizes = [1, 256], strides = [1, 1]} : vector<1x384xf32> to vector<1x256xf32>
    %c-2_i32 = arith.constant -2 : i32
    %52 = vector.broadcast %c-2_i32 : i32 to vector<1x256xi32>
    %53 = arith.cmpi sge, %5, %52 : vector<1x256xi32>
    %c14_i32 = arith.constant 14 : i32
    %54 = vector.broadcast %c14_i32 : i32 to vector<1x256xi32>
    %55 = arith.cmpi slt, %5, %54 : vector<1x256xi32>
    %56 = arith.andi %53, %55 : vector<1x256xi1>
    %cst_11 = arith.constant 0.000000e+00 : f32
    %57 = vector.broadcast %cst_11 : f32 to vector<1x256xf32>
    %58 = arith.select %56, %51, %57 : vector<1x256xi1>, vector<1x256xf32>
    %c378_i32 = arith.constant 378 : i32
    %59 = tpu.dynamic_rotate %4 by %c378_i32 dim 1 : vector<1x384xf32>, i32 -> vector<1x384xf32>
    %60 = vector.extract_strided_slice %59 {offsets = [0, 0], sizes = [1, 256], strides = [1, 1]} : vector<1x384xf32> to vector<1x256xf32>
    %c-3_i32 = arith.constant -3 : i32
    %61 = vector.broadcast %c-3_i32 : i32 to vector<1x256xi32>
    %62 = arith.cmpi sge, %5, %61 : vector<1x256xi32>
    %c13_i32 = arith.constant 13 : i32
    %63 = vector.broadcast %c13_i32 : i32 to vector<1x256xi32>
    %64 = arith.cmpi slt, %5, %63 : vector<1x256xi32>
    %65 = arith.andi %62, %64 : vector<1x256xi1>
    %cst_12 = arith.constant 0.000000e+00 : f32
    %66 = vector.broadcast %cst_12 : f32 to vector<1x256xf32>
    %67 = arith.select %65, %60, %66 : vector<1x256xi1>, vector<1x256xf32>
    %c368_i32 = arith.constant 368 : i32
    %68 = tpu.dynamic_rotate %4 by %c368_i32 dim 1 : vector<1x384xf32>, i32 -> vector<1x384xf32>
    %69 = vector.extract_strided_slice %68 {offsets = [0, 0], sizes = [1, 256], strides = [1, 1]} : vector<1x384xf32> to vector<1x256xf32>
    %c3_i32_13 = arith.constant 3 : i32
    %70 = vector.broadcast %c3_i32_13 : i32 to vector<1x256xi32>
    %71 = arith.cmpi sge, %5, %70 : vector<1x256xi32>
    %c19_i32_14 = arith.constant 19 : i32
    %72 = vector.broadcast %c19_i32_14 : i32 to vector<1x256xi32>
    %73 = arith.cmpi slt, %5, %72 : vector<1x256xi32>
    %74 = arith.andi %71, %73 : vector<1x256xi1>
    %cst_15 = arith.constant 0.000000e+00 : f32
    %75 = vector.broadcast %cst_15 : f32 to vector<1x256xf32>
    %76 = arith.select %74, %69, %75 : vector<1x256xi1>, vector<1x256xf32>
    %c367_i32 = arith.constant 367 : i32
    %77 = tpu.dynamic_rotate %4 by %c367_i32 dim 1 : vector<1x384xf32>, i32 -> vector<1x384xf32>
    %78 = vector.extract_strided_slice %77 {offsets = [0, 0], sizes = [1, 256], strides = [1, 1]} : vector<1x384xf32> to vector<1x256xf32>
    %c2_i32_16 = arith.constant 2 : i32
    %79 = vector.broadcast %c2_i32_16 : i32 to vector<1x256xi32>
    %80 = arith.cmpi sge, %5, %79 : vector<1x256xi32>
    %c18_i32_17 = arith.constant 18 : i32
    %81 = vector.broadcast %c18_i32_17 : i32 to vector<1x256xi32>
    %82 = arith.cmpi slt, %5, %81 : vector<1x256xi32>
    %83 = arith.andi %80, %82 : vector<1x256xi1>
    %cst_18 = arith.constant 0.000000e+00 : f32
    %84 = vector.broadcast %cst_18 : f32 to vector<1x256xf32>
    %85 = arith.select %83, %78, %84 : vector<1x256xi1>, vector<1x256xf32>
    %c366_i32 = arith.constant 366 : i32
    %86 = tpu.dynamic_rotate %4 by %c366_i32 dim 1 : vector<1x384xf32>, i32 -> vector<1x384xf32>
    %87 = vector.extract_strided_slice %86 {offsets = [0, 0], sizes = [1, 256], strides = [1, 1]} : vector<1x384xf32> to vector<1x256xf32>
    %c1_i32_19 = arith.constant 1 : i32
    %88 = vector.broadcast %c1_i32_19 : i32 to vector<1x256xi32>
    %89 = arith.cmpi sge, %5, %88 : vector<1x256xi32>
    %c17_i32_20 = arith.constant 17 : i32
    %90 = vector.broadcast %c17_i32_20 : i32 to vector<1x256xi32>
    %91 = arith.cmpi slt, %5, %90 : vector<1x256xi32>
    %92 = arith.andi %89, %91 : vector<1x256xi1>
    %cst_21 = arith.constant 0.000000e+00 : f32
    %93 = vector.broadcast %cst_21 : f32 to vector<1x256xf32>
    %94 = arith.select %92, %87, %93 : vector<1x256xi1>, vector<1x256xf32>
    %c365_i32 = arith.constant 365 : i32
    %95 = tpu.dynamic_rotate %4 by %c365_i32 dim 1 : vector<1x384xf32>, i32 -> vector<1x384xf32>
    %96 = vector.extract_strided_slice %95 {offsets = [0, 0], sizes = [1, 256], strides = [1, 1]} : vector<1x384xf32> to vector<1x256xf32>
    %c0_i32_22 = arith.constant 0 : i32
    %97 = vector.broadcast %c0_i32_22 : i32 to vector<1x256xi32>
    %98 = arith.cmpi sge, %5, %97 : vector<1x256xi32>
    %c16_i32_23 = arith.constant 16 : i32
    %99 = vector.broadcast %c16_i32_23 : i32 to vector<1x256xi32>
    %100 = arith.cmpi slt, %5, %99 : vector<1x256xi32>
    %101 = arith.andi %98, %100 : vector<1x256xi1>
    %cst_24 = arith.constant 0.000000e+00 : f32
    %102 = vector.broadcast %cst_24 : f32 to vector<1x256xf32>
    %103 = arith.select %101, %96, %102 : vector<1x256xi1>, vector<1x256xf32>
    %c364_i32 = arith.constant 364 : i32
    %104 = tpu.dynamic_rotate %4 by %c364_i32 dim 1 : vector<1x384xf32>, i32 -> vector<1x384xf32>
    %105 = vector.extract_strided_slice %104 {offsets = [0, 0], sizes = [1, 256], strides = [1, 1]} : vector<1x384xf32> to vector<1x256xf32>
    %c-1_i32_25 = arith.constant -1 : i32
    %106 = vector.broadcast %c-1_i32_25 : i32 to vector<1x256xi32>
    %107 = arith.cmpi sge, %5, %106 : vector<1x256xi32>
    %c15_i32_26 = arith.constant 15 : i32
    %108 = vector.broadcast %c15_i32_26 : i32 to vector<1x256xi32>
    %109 = arith.cmpi slt, %5, %108 : vector<1x256xi32>
    %110 = arith.andi %107, %109 : vector<1x256xi1>
    %cst_27 = arith.constant 0.000000e+00 : f32
    %111 = vector.broadcast %cst_27 : f32 to vector<1x256xf32>
    %112 = arith.select %110, %105, %111 : vector<1x256xi1>, vector<1x256xf32>
    %c363_i32 = arith.constant 363 : i32
    %113 = tpu.dynamic_rotate %4 by %c363_i32 dim 1 : vector<1x384xf32>, i32 -> vector<1x384xf32>
    %114 = vector.extract_strided_slice %113 {offsets = [0, 0], sizes = [1, 256], strides = [1, 1]} : vector<1x384xf32> to vector<1x256xf32>
    %c-2_i32_28 = arith.constant -2 : i32
    %115 = vector.broadcast %c-2_i32_28 : i32 to vector<1x256xi32>
    %116 = arith.cmpi sge, %5, %115 : vector<1x256xi32>
    %c14_i32_29 = arith.constant 14 : i32
    %117 = vector.broadcast %c14_i32_29 : i32 to vector<1x256xi32>
    %118 = arith.cmpi slt, %5, %117 : vector<1x256xi32>
    %119 = arith.andi %116, %118 : vector<1x256xi1>
    %cst_30 = arith.constant 0.000000e+00 : f32
    %120 = vector.broadcast %cst_30 : f32 to vector<1x256xf32>
    %121 = arith.select %119, %114, %120 : vector<1x256xi1>, vector<1x256xf32>
    %c362_i32 = arith.constant 362 : i32
    %122 = tpu.dynamic_rotate %4 by %c362_i32 dim 1 : vector<1x384xf32>, i32 -> vector<1x384xf32>
    %123 = vector.extract_strided_slice %122 {offsets = [0, 0], sizes = [1, 256], strides = [1, 1]} : vector<1x384xf32> to vector<1x256xf32>
    %c-3_i32_31 = arith.constant -3 : i32
    %124 = vector.broadcast %c-3_i32_31 : i32 to vector<1x256xi32>
    %125 = arith.cmpi sge, %5, %124 : vector<1x256xi32>
    %c13_i32_32 = arith.constant 13 : i32
    %126 = vector.broadcast %c13_i32_32 : i32 to vector<1x256xi32>
    %127 = arith.cmpi slt, %5, %126 : vector<1x256xi32>
    %128 = arith.andi %125, %127 : vector<1x256xi1>
    %cst_33 = arith.constant 0.000000e+00 : f32
    %129 = vector.broadcast %cst_33 : f32 to vector<1x256xf32>
    %130 = arith.select %128, %123, %129 : vector<1x256xi1>, vector<1x256xf32>
    %c352_i32 = arith.constant 352 : i32
    %131 = tpu.dynamic_rotate %4 by %c352_i32 dim 1 : vector<1x384xf32>, i32 -> vector<1x384xf32>
    %132 = vector.extract_strided_slice %131 {offsets = [0, 0], sizes = [1, 256], strides = [1, 1]} : vector<1x384xf32> to vector<1x256xf32>
    %c3_i32_34 = arith.constant 3 : i32
    %133 = vector.broadcast %c3_i32_34 : i32 to vector<1x256xi32>
    %134 = arith.cmpi sge, %5, %133 : vector<1x256xi32>
    %c19_i32_35 = arith.constant 19 : i32
    %135 = vector.broadcast %c19_i32_35 : i32 to vector<1x256xi32>
    %136 = arith.cmpi slt, %5, %135 : vector<1x256xi32>
    %137 = arith.andi %134, %136 : vector<1x256xi1>
    %cst_36 = arith.constant 0.000000e+00 : f32
    %138 = vector.broadcast %cst_36 : f32 to vector<1x256xf32>
    %139 = arith.select %137, %132, %138 : vector<1x256xi1>, vector<1x256xf32>
    %c351_i32 = arith.constant 351 : i32
    %140 = tpu.dynamic_rotate %4 by %c351_i32 dim 1 : vector<1x384xf32>, i32 -> vector<1x384xf32>
    %141 = vector.extract_strided_slice %140 {offsets = [0, 0], sizes = [1, 256], strides = [1, 1]} : vector<1x384xf32> to vector<1x256xf32>
    %c2_i32_37 = arith.constant 2 : i32
    %142 = vector.broadcast %c2_i32_37 : i32 to vector<1x256xi32>
    %143 = arith.cmpi sge, %5, %142 : vector<1x256xi32>
    %c18_i32_38 = arith.constant 18 : i32
    %144 = vector.broadcast %c18_i32_38 : i32 to vector<1x256xi32>
    %145 = arith.cmpi slt, %5, %144 : vector<1x256xi32>
    %146 = arith.andi %143, %145 : vector<1x256xi1>
    %cst_39 = arith.constant 0.000000e+00 : f32
    %147 = vector.broadcast %cst_39 : f32 to vector<1x256xf32>
    %148 = arith.select %146, %141, %147 : vector<1x256xi1>, vector<1x256xf32>
    %c350_i32 = arith.constant 350 : i32
    %149 = tpu.dynamic_rotate %4 by %c350_i32 dim 1 : vector<1x384xf32>, i32 -> vector<1x384xf32>
    %150 = vector.extract_strided_slice %149 {offsets = [0, 0], sizes = [1, 256], strides = [1, 1]} : vector<1x384xf32> to vector<1x256xf32>
    %c1_i32_40 = arith.constant 1 : i32
    %151 = vector.broadcast %c1_i32_40 : i32 to vector<1x256xi32>
    %152 = arith.cmpi sge, %5, %151 : vector<1x256xi32>
    %c17_i32_41 = arith.constant 17 : i32
    %153 = vector.broadcast %c17_i32_41 : i32 to vector<1x256xi32>
    %154 = arith.cmpi slt, %5, %153 : vector<1x256xi32>
    %155 = arith.andi %152, %154 : vector<1x256xi1>
    %cst_42 = arith.constant 0.000000e+00 : f32
    %156 = vector.broadcast %cst_42 : f32 to vector<1x256xf32>
    %157 = arith.select %155, %150, %156 : vector<1x256xi1>, vector<1x256xf32>
    %c349_i32 = arith.constant 349 : i32
    %158 = tpu.dynamic_rotate %4 by %c349_i32 dim 1 : vector<1x384xf32>, i32 -> vector<1x384xf32>
    %159 = vector.extract_strided_slice %158 {offsets = [0, 0], sizes = [1, 256], strides = [1, 1]} : vector<1x384xf32> to vector<1x256xf32>
    %c0_i32_43 = arith.constant 0 : i32
    %160 = vector.broadcast %c0_i32_43 : i32 to vector<1x256xi32>
    %161 = arith.cmpi sge, %5, %160 : vector<1x256xi32>
    %c16_i32_44 = arith.constant 16 : i32
    %162 = vector.broadcast %c16_i32_44 : i32 to vector<1x256xi32>
    %163 = arith.cmpi slt, %5, %162 : vector<1x256xi32>
    %164 = arith.andi %161, %163 : vector<1x256xi1>
    %cst_45 = arith.constant 0.000000e+00 : f32
    %165 = vector.broadcast %cst_45 : f32 to vector<1x256xf32>
    %166 = arith.select %164, %159, %165 : vector<1x256xi1>, vector<1x256xf32>
    %c348_i32 = arith.constant 348 : i32
    %167 = tpu.dynamic_rotate %4 by %c348_i32 dim 1 : vector<1x384xf32>, i32 -> vector<1x384xf32>
    %168 = vector.extract_strided_slice %167 {offsets = [0, 0], sizes = [1, 256], strides = [1, 1]} : vector<1x384xf32> to vector<1x256xf32>
    %c-1_i32_46 = arith.constant -1 : i32
    %169 = vector.broadcast %c-1_i32_46 : i32 to vector<1x256xi32>
    %170 = arith.cmpi sge, %5, %169 : vector<1x256xi32>
    %c15_i32_47 = arith.constant 15 : i32
    %171 = vector.broadcast %c15_i32_47 : i32 to vector<1x256xi32>
    %172 = arith.cmpi slt, %5, %171 : vector<1x256xi32>
    %173 = arith.andi %170, %172 : vector<1x256xi1>
    %cst_48 = arith.constant 0.000000e+00 : f32
    %174 = vector.broadcast %cst_48 : f32 to vector<1x256xf32>
    %175 = arith.select %173, %168, %174 : vector<1x256xi1>, vector<1x256xf32>
    %c347_i32 = arith.constant 347 : i32
    %176 = tpu.dynamic_rotate %4 by %c347_i32 dim 1 : vector<1x384xf32>, i32 -> vector<1x384xf32>
    %177 = vector.extract_strided_slice %176 {offsets = [0, 0], sizes = [1, 256], strides = [1, 1]} : vector<1x384xf32> to vector<1x256xf32>
    %c-2_i32_49 = arith.constant -2 : i32
    %178 = vector.broadcast %c-2_i32_49 : i32 to vector<1x256xi32>
    %179 = arith.cmpi sge, %5, %178 : vector<1x256xi32>
    %c14_i32_50 = arith.constant 14 : i32
    %180 = vector.broadcast %c14_i32_50 : i32 to vector<1x256xi32>
    %181 = arith.cmpi slt, %5, %180 : vector<1x256xi32>
    %182 = arith.andi %179, %181 : vector<1x256xi1>
    %cst_51 = arith.constant 0.000000e+00 : f32
    %183 = vector.broadcast %cst_51 : f32 to vector<1x256xf32>
    %184 = arith.select %182, %177, %183 : vector<1x256xi1>, vector<1x256xf32>
    %c346_i32 = arith.constant 346 : i32
    %185 = tpu.dynamic_rotate %4 by %c346_i32 dim 1 : vector<1x384xf32>, i32 -> vector<1x384xf32>
    %186 = vector.extract_strided_slice %185 {offsets = [0, 0], sizes = [1, 256], strides = [1, 1]} : vector<1x384xf32> to vector<1x256xf32>
    %c-3_i32_52 = arith.constant -3 : i32
    %187 = vector.broadcast %c-3_i32_52 : i32 to vector<1x256xi32>
    %188 = arith.cmpi sge, %5, %187 : vector<1x256xi32>
    %c13_i32_53 = arith.constant 13 : i32
    %189 = vector.broadcast %c13_i32_53 : i32 to vector<1x256xi32>
    %190 = arith.cmpi slt, %5, %189 : vector<1x256xi32>
    %191 = arith.andi %188, %190 : vector<1x256xi1>
    %cst_54 = arith.constant 0.000000e+00 : f32
    %192 = vector.broadcast %cst_54 : f32 to vector<1x256xf32>
    %193 = arith.select %191, %186, %192 : vector<1x256xi1>, vector<1x256xf32>
    %cst_55 = arith.constant 1.000000e+00 : f32
    %194 = vector.broadcast %cst_55 : f32 to vector<1x256xf32>
    %195 = tpu.concatenate %13, %22, %31, %40, %49, %58, %67, %76, %85, %94, %103, %112, %121, %130, %139, %148 in 0 : vector<1x256xf32>, vector<1x256xf32>, vector<1x256xf32>, vector<1x256xf32>, vector<1x256xf32>, vector<1x256xf32>, vector<1x256xf32>, vector<1x256xf32>, vector<1x256xf32>, vector<1x256xf32>, vector<1x256xf32>, vector<1x256xf32>, vector<1x256xf32>, vector<1x256xf32>, vector<1x256xf32>, vector<1x256xf32> -> vector<16x256xf32>
    %196 = tpu.concatenate %157, %166, %175, %184, %193, %194 in 0 : vector<1x256xf32>, vector<1x256xf32>, vector<1x256xf32>, vector<1x256xf32>, vector<1x256xf32>, vector<1x256xf32> -> vector<6x256xf32>
    %197 = tpu.concatenate %195, %196 in 0 : vector<16x256xf32>, vector<6x256xf32> -> vector<22x256xf32>
    %c0_56 = arith.constant 0 : index
    %c0_57 = arith.constant 0 : index
    %198 = vector.load %arg2[%c0_56, %c0_57] : memref<16x22xf32, #tpu.memory_space<vmem>>, vector<16x22xf32>
    %cst_58 = arith.constant dense<0.000000e+00> : vector<16x256xf32>
    %199 = tpu.matmul %198, %197, %cst_58 {dimension_numbers = #tpu.dot_dimension_numbers<[1], [0], [0], [1], [0, 0, 1, 1], [], []>} : vector<16x22xf32>, vector<22x256xf32>, vector<16x256xf32> -> vector<16x256xf32>
    %cst_59 = arith.constant 0.000000e+00 : f32
    %200 = vector.broadcast %cst_59 : f32 to vector<16x256xf32>
    %201 = arith.cmpf oge, %199, %200 : vector<16x256xf32>
    %cst_60 = arith.constant 2.000000e-01 : f32
    %202 = vector.broadcast %cst_60 : f32 to vector<16x256xf32>
    %203 = arith.mulf %202, %199 : vector<16x256xf32>
    %204 = arith.select %201, %199, %203 : vector<16x256xi1>, vector<16x256xf32>
    %c0_61 = arith.constant 0 : index
    %c0_62 = arith.constant 0 : index
    %c0_63 = arith.constant 0 : index
    %205 = vector.load %arg6[%c0_61, %c0_62, %c0_63] : memref<1x16x256xf32, #tpu.memory_space<vmem>>, vector<1x16x256xf32>
    %206 = vector.shape_cast %205 : vector<1x16x256xf32> to vector<16x256xf32>
    %207 = vector.shape_cast %204 : vector<16x256xf32> to vector<1x16x256xf32>
    tpu.vector_store %arg6[%c0_61, %c0_62, %c0_63], %207 {strides = array<i32>} : memref<1x16x256xf32, #tpu.memory_space<vmem>>, vector<1x16x256xf32>,
    return
  }
  func.func @transform_0(%arg0: i32, %arg1: i32) -> (i32, i32) {
    %c0_i32 = arith.constant 0 : i32
    %c0_i32_0 = arith.constant 0 : i32
    %c0_i32_1 = arith.constant 0 : i32
    return %c0_i32, %c0_i32_0 : i32, i32
  }
  func.func @transform_1(%arg0: i32, %arg1: i32) -> (i32, i32) {
    %c0_i32 = arith.constant 0 : i32
    %c0_i32_0 = arith.constant 0 : i32
    return %c0_i32, %arg1 : i32, i32
  }
  func.func @transform_2(%arg0: i32, %arg1: i32) -> (i32, i32, i32) {
    %c0_i32 = arith.constant 0 : i32
    %c0_i32_0 = arith.constant 0 : i32
    return %arg0, %c0_i32, %arg1 : i32, i32, i32
  }
  func.func @transform_3(%arg0: i32, %arg1: i32) -> (i32, i32, i32) {
    %c1_i32 = arith.constant 1 : i32
    %0 = arith.addi %arg1, %c1_i32 : i32
    %c2_i32 = arith.constant 2 : i32
    %1 = arith.muli %0, %c2_i32 : i32
    %c0_i32 = arith.constant 0 : i32
    %c0_i32_0 = arith.constant 0 : i32
    return %arg0, %c0_i32, %1 : i32, i32, i32
  }
  func.func @transform_4(%arg0: i32, %arg1: i32) -> (i32, i32, i32) {
    %c0_i32 = arith.constant 0 : i32
    %c0_i32_0 = arith.constant 0 : i32
    return %arg0, %c0_i32, %arg1 : i32, i32, i32
  }
}

</mosaic_0001>

<bundles_post_ra>
// kernel: tpu_custom_call.1
= control target key start
LH: loop header
LB: loop body
LE: loop exit
PB: predicated region body
PF: predicated region fallthrough
CT: control target
= control target key end

     0   :  { %s2031_s0 = inlined_call_operand.hbm [shape: f32[16,22], index: 0, kind: input, shape index: {}]   ;;  %s2032_s1 = inlined_call_operand.hbm [shape: s32[1,256], index: 1, kind: input, shape index: {}]   ;;  %s2033_s2 = inlined_call_operand.hbm [shape: f32[2,1,512], index: 2, kind: input, shape index: {}]   ;;  %s2034_s3 = inlined_call_operand.hbm [shape: f32[2,1,512], index: 3, kind: input, shape index: {}]   ;;  %s2035_s4 = inlined_call_operand.hbm [shape: f32[2,16,256], index: 4, kind: output, shape index: {}]  }
   0x1   :  { %2040 = sst [smem:[#allocation18_spill]] %s2031_s0 }
   0x2   :  { %2041 = sst [smem:[#allocation19_spill]] %s2033_s2 }
   0x3   :  { %9 = vsyncpa [#allocation3], 0 }
   0x4   :  { %10 = vsyncpa [#allocation6], 0 }
   0x5   :  { %11 = vsyncpa [#allocation4], 0 }
   0x6   :  { %13 = vsyncpa [#allocation4 + $0x1], 0  ;;  %s1505_s15 = smov 0   ;;  %s1507_s16 = smov 0  }
   0x7   :  { %s1509_s17 = smov 0   ;;  %s1511_s18 = smov 0  }
   0x8   :  { %s1513_s19 = smov 0   ;;  %s1515_s20 = smov 0  }
   0x9 LB: > { %2042 = sst [smem:[#allocation14_spill]] %s1440_s17  ;;  %s1536_s21 = sadd.s32 4294967295, %s1452_s20   ;;  %s1452_s20 = sphi %s1515_s20, %s19_s20   ;;  %s1448_s19 = sphi %s1513_s19, %s2080_s19   ;;  %s1444_s18 = sphi %s1511_s18, %s2075_s18   ;;  %s1440_s17 = sphi %s1509_s17, %s2079_s17   ;;  %s1436_s16 = sphi %s1507_s16, %s2078_s16   ;;  %s1432_s15 = sphi %s1505_s15, %s2077_s15  }
   0xa   : > { %2043 = sst [smem:[#allocation15_spill]] %s1448_s19  ;;  %s1024_s22 = sadd.s32 4294967294, %s1452_s20  }
   0xb   : > { %p100_p0 = scmp.ne.s32.totalorder %s1436_s16, %s1432_s15  ;;  %p101_p1 = scmp.eq.s32.totalorder %s1536_s21, 0 }
   0xc   : > { %p158_p2 = scmp.eq.s32.totalorder %s1536_s21, 1  ;;  %p164_p3 = scmp.eq.s32.totalorder %s1024_s22, 1 }
   0xd   : > { %p1545_p4 = por %p101_p1, %p100_p0  ;;  %p1025_p5 = scmp.ge.s32.totalorder %s1452_s20, 1 }
   0xe   : > { %p1550_p6 = por %p164_p3, %p100_p0  ;;  %p171_p7 = scmp.lt.s32.totalorder %s1452_s20, 3 }
   0xf   : > { %s2046_s0 = sld [smem:[#allocation18_spill]]  ;;  %s1454_s29 = smov [#allocation2]  }
  0x10   : > { %p1558_p8 = pnand %p1025_p5, %p171_p7  ;;  %s184_s30 = sshll.u32 %s1454_s29, 4  ;;  %s185_s30 = int_to_ptr.vmem [resolvable:$true] %s184_s30 }
  0x11   : > { %p1028_p11 = scmp.ge.s32.totalorder %s1452_s20, 2  ;;  %s1455_s6 = smov 128  }
  0x12   : > { %p1069_p9 = pneg %p1558_p8  ;;  %s1456_s7 = smov 8  }
  0x13   : > { %s31_s8 = sadd.s32 1, %s1448_s19  ;;  %s87_s9 = sadd.s32 1, %s1440_s17 }
  0x14   : > { %p1566_p10 = pnand %p1069_p9, %p101_p1  ;;  %p33_p12 = scmp.ge.s32.totalorder %s31_s8, 2 }
  0x15   : > { %s182_s27 = sshll.u32 %s2046_s0, 4  ;;  %p94_p13 = scmp.ne.s32.totalorder %s1440_s17, %s1436_s16  ;;  %s183_s27 = int_to_ptr.hbm [resolvable:$true] %s182_s27 }
  0x16   : > { %1072 = dma.hbm_to_vmem [thread:$0]  (!%p1566_p10), %s183_s27, 256, %s185_s30, [#allocation3], %s1455_s6, %s1455_s6, %s1456_s7  }
  0x17   : > { %p95_p0 = scmp.eq.s32.totalorder %s1452_s20, 0  ;;  %s2082_s8 = smov (%p33_p12, %s31_s8), 0 }
  0x18   : > { %2049 = sst [smem:[#allocation16_spill]] %s2082_s8  ;;  %p1586_p5 = por %p158_p2, %p94_p13 }
  0x19   : > { %p1580_p3 = por %p95_p0, %p94_p13  ;;  %s82_s12 = ssub.s32 %s1448_s19, %s2082_s8 }
  0x1a   : > { %p1089_p7 = scmp.lt.s32.totalorder %s1452_s20, 2  ;;  %p85_p9 = scmp.eq.s32.totalorder %s82_s12, 0 }
  0x1b   : > { %s212_s13 = sand.u32 1, %s1452_s20   ;;  %s214_s14 = sand.u32 1, %s1440_s17  }
  0x1c   : > { %s1596_s22 = scalar_select %p85_p9, %s1440_s17, %s87_s9  }
  0x1d   : > { %s1029_s25 = sshll.u32 %s214_s14, 1  ;;  %s1030_s26 = sshll.u32 %s1448_s19, 2 }
  0x1e   : > { %2052 = sst [smem:[#allocation17_spill]] %s1596_s22  ;;  %s216_s7 = scalar_lea.vmem [#allocation7], %s1029_s25 }
  0x1f   : > { %s2053_s2 = sld [smem:[#allocation19_spill]]  ;;  %s226_s0 = sshll.u32 %s216_s7, 4  ;;  %s227_s0 = int_to_ptr.vmem [resolvable:$true] %s226_s0 }
  0x20   : > { %p1606_p2 = pnand %p1089_p7, %p1580_p3  ;;  %s199_s19 = sshll.u32 %s2032_s1, 4  ;;  %s200_s19 = int_to_ptr.hbm [resolvable:$true] %s199_s19 }
  0x21   : > { %s1457_s27 = smov [#allocation5]   ;;  %s938_s7 = scalar_lea.hbm %s2034_s3, %s1030_s26 }
  0x22   : > { %s201_s29 = sshll.u32 %s1457_s27, 4  ;;  %s939_s17 = scalar_lea.hbm %s938_s7, 2  ;;  %s202_s29 = int_to_ptr.vmem [resolvable:$true] %s201_s29 }
  0x23   : > { %1075 = dma.hbm_to_vmem [thread:$0]  (!%p1566_p10), %s200_s19, 32, %s202_s29, [#allocation6]  }
  0x24   : > { %s245_s8 = sshll.u32 %s939_s17, 4  ;;  %s246_s8 = int_to_ptr.hbm [resolvable:$true] %s245_s8 }
  0x25   : > { %s222_s30 = scalar_lea.hbm %s2053_s2, %s1030_s26  ;;  %s236_s2 = scalar_lea.vmem [#allocation8], %s214_s14 }
  0x26   : > { %s224_s6 = sshll.u32 %s222_s30, 4  ;;  %s213_s30 = scalar_lea.sflag [#allocation3], %s212_s13  ;;  %s225_s6 = int_to_ptr.hbm [resolvable:$true] %s224_s6 }
  0x27   : > { %1079 = dma.hbm_to_vmem [thread:$0]  (!%p1606_p2), %s225_s6, 32, %s227_s0, %s213_s30  }
  0x28   : > { %s247_s22 = sshll.u32 %s236_s2, 4  ;;  %256 = sbr.rel (%p1558_p8) target bundleno = 434 (0x1b2), region = 36  ;;  %s248_s22 = int_to_ptr.vmem [resolvable:$true] %s247_s22 }
  0x29   : > { %1082 = dma.hbm_to_vmem [thread:$0]  (!%p1606_p2), %s246_s8, 16, %s248_s22, %s213_s30  }
  0x2d   : > { %1415 = dma.done.wait (%p101_p1), [#allocation3], 256  }
  0x2e   : > { %1417 = vsyncadd (%p101_p1), [#allocation3], 4294967040 }
  0x2f   : > { %1419 = dma.done.wait (%p101_p1), [#allocation6], 32  }
  0x30   : > { %1421 = vsyncadd (%p101_p1), [#allocation6], 4294967264  ;;  %s268_s0 = sand.u32 1, %s1536_s21   ;;  %s1634_s2 = sand.u32 1, %s1436_s16  }
  0x31   : > { %s1035_s17 = sshll.u32 %s1634_s2, 1  ;;  %s269_s19 = scalar_lea.sflag [#allocation3], %s268_s0 }
  0x32   : > { %s272_s28 = scalar_lea.vmem [#allocation7], %s1035_s17 }
  0x33   : > { %1423 = dma.done.wait (%p1545_p4), %s269_s19, 48  }
  0x34   : > { %1425 = vsyncadd (%p1545_p4), %s269_s19, 4294967248  ;;  %v316_v0 = vld [vmem:[%s272_s28] sm:$0x3]  ;;  %s281_s5 = scalar_lea.vmem [#allocation8], %s1634_s2  ;;  %s1458_s13 = smov 93   ;;  %v338_v5 = vlaneseq  ;;  %vm328_vm1 = vcmask 1040384  }
  0x35   : > { %v317_v1 = vld [vmem:[%s281_s5] sm:$0x1]  ;;  %v1642_v2 = vperm.slane %v316_v0, 1  ;;  %s1459_s21 = smov 94   ;;  %s1460_s14 = smov 111   ;;  %v1652_v4 = vperm.slane %v316_v0, 0 }
  0x36   : > { %596 = vrot.lane.b32.xlu2 %v317_v1, %s1458_s13  ;;  %581 = vrot.lane.b32.xlu1 %v317_v1, %s1459_s21  ;;  %s1461_s23 = smov 110   ;;  %s1462_s22 = smov 92   ;;  %v1680_v7 = vand.u32 127, %v338_v5  ;;  %v1702_v28 = vld [vmem:[#allocation5] sm:$0x3] }
  0x37   : > { %v1645_v3 = vpack.i.bf16 %v317_v1, %v1642_v2  ;;  %s1463_s26 = smov 109   ;;  %s1464_s6 = smov 127   ;;  %vm361_vm4 = vcmp.ge.s32.totalorder %v1702_v28, 1  ;;  %vm362_vm5 = vcmp.lt.s32.totalorder %v1702_v28, 17  ;;  %vm343_vm6 = vcmp.ge.s32.totalorder %v1702_v28, 2 }
  0x38   : > { %s1465_s12 = smov 108   ;;  %s1466_s9 = smov 126   ;;  %vm598_vm0 = vcmp.lt.s32.totalorder %v1680_v7, 93  ;;  %vm478_vm2 = vcmp.lt.s32.totalorder %v1680_v7, 110  ;;  %vm463_vm3 = vcmp.lt.s32.totalorder %v1680_v7, 111  ;;  %vm344_vm7 = vcmp.lt.s32.totalorder %v1702_v28, 18  ;;  %vm1712_vm8 = vmand %vm361_vm4, %vm362_vm5 }
  0x39   : > { %1168 = vrot.lane.b32.xlu0 %v1645_v3, %s1460_s14  ;;  %s1467_s27 = smov 91   ;;  %s1468_s29 = smov 107   ;;  %vm1716_vm9 = vmand %vm343_vm6, %vm344_vm7  ;;  %vm583_vm10 = vcmp.lt.s32.totalorder %v1680_v7, 94  ;;  %vm379_vm11 = vcmp.ge.s32.totalorder %v1702_v28, 0  ;;  %vm380_vm12 = vcmp.lt.s32.totalorder %v1702_v28, 16  ;;  %vm493_vm14 = vcmp.lt.s32.totalorder %v1680_v7, 109 }
  0x3a   : > { %s1469_s30 = smov 90   ;;  %s1470_s10 = smov 106   ;;  %vm1730_vm13 = vmand %vm379_vm11, %vm380_vm12  ;;  %vm340_vm15 = vcmp.lt.s32.totalorder %v1680_v7, 127  ;;  %vm325_vm4 = vcmp.lt.s32.totalorder %v1702_v28, 19  ;;  %vm613_vm5 = vcmp.lt.s32.totalorder %v1680_v7, 92  ;;  %vm397_vm6 = vcmp.ge.s32.totalorder %v1702_v28, 4294967295 }
  0x3b   : > { %s1471_s25 = smov 125   ;;  %s1472_s7 = smov 124   ;;  %vm398_vm7 = vcmp.lt.s32.totalorder %v1702_v28, 15  ;;  %vm358_vm11 = vcmp.lt.s32.totalorder %v1680_v7, 126  ;;  %vm643_vm12 = vcmp.lt.s32.totalorder %v1680_v7, 90 }
  0x3c   : > { %s1473_s8 = smov 96   ;;  %s1474_s0 = smov 123  }
  0x3d   : > { %s1475_s17 = smov 122   ;;  %s1476_s19 = smov 95  }
  0x3e   : > { %594 = vrot.lane.b32.xlu2 %v1642_v2, %s1458_s13  ;;  %579 = vrot.lane.b32.xlu1 %v1642_v2, %s1459_s21  ;;  %s1477_s28 = smov 112   ;;  %s1036_s5 = sshll.u32 %s1634_s2, 5 }
  0x41   : > { %1173 = vrot.lane.b32.xlu0 %v1645_v3, %s1461_s23 }
  0x46   : > { %611 = vrot.lane.b32.xlu2 %v317_v1, %s1462_s22  ;;  %609 = vrot.lane.b32.xlu1 %v1642_v2, %s1462_s22 }
  0x49   : > { %1178 = vrot.lane.b32.xlu0 %v1645_v3, %s1463_s26 }
  0x4e   : > { %472 = vrot.lane.b32.xlu2 %v1652_v4, %s1461_s23  ;;  %457 = vrot.lane.b32.xlu1 %v1652_v4, %s1460_s14 }
  0x51   : > { %1183 = vrot.lane.b32.xlu0 %v1645_v3, %s1464_s6 }
  0x56   : > { %592 = vrot.lane.b32.xlu2 %v1652_v4, %s1458_s13  ;;  %577 = vrot.lane.b32.xlu1 %v1652_v4, %s1459_s21  ;;  %s1048_s13 = sshll.u32 %s1444_s18, 5  ;;  %s879_s18 = scalar_lea.sflag [#allocation4], %s1634_s2 }
  0x57   : > { %s892_s23 = scalar_lea.hbm %s2035_s4, %s1048_s13 }
  0x59   : > { %1188 = vrot.lane.b32.xlu0 %v1645_v3, %s1465_s12 }
  0x5e   : > { %1193 = vrot.lane.b32.xlu2 %v1645_v3, %s1466_s9  ;;  %626 = vrot.lane.b32.xlu1 %v317_v1, %s1467_s27 }
  0x61   : > { %624 = vrot.lane.b32.xlu0 %v1642_v2, %s1467_s27 }
  0x66   : > { %607 = vrot.lane.b32.xlu2 %v1652_v4, %s1462_s22  ;;  %1198 = vrot.lane.b32.xlu1 %v1645_v3, %s1468_s29  ;;  %s310_s22 = scalar_lea.vmem [#allocation9], %s1036_s5 }
  0x69   : > { %487 = vrot.lane.b32.xlu0 %v1652_v4, %s1463_s26  ;;  %s893_s26 = sshll.u32 %s310_s22, 4  ;;  %s1994_s26 = int_to_ptr.vmem [resolvable:$true] %s893_s26 }
  0x6e   : > { %332 = vrot.lane.b32.xlu2 %v1652_v4, %s1464_s6  ;;  %641 = vrot.lane.b32.xlu1 %v317_v1, %s1469_s30  ;;  %s895_s6 = sshll.u32 %s892_s23, 4  ;;  %s896_s6 = int_to_ptr.hbm [resolvable:$true] %s895_s6 }
  0x71   : > { %639 = vrot.lane.b32.xlu0 %v1642_v2, %s1469_s30 }
  0x76   : > { %502 = vrot.lane.b32.xlu1 %v1652_v4, %s1465_s12  ;;  %1208 = vrot.lane.b32.xlu2 %v1645_v3, %s1470_s10  ;;  %s1376_s12 = sshra.s32 %s896_s6, 4  ;;  %s1377_s12 = int_to_ptr.hbm [resolvable:$true] %s1376_s12 }
  0x77   : > { %p1383_p10 = scmp.lt.s32.totalorder %s1377_s12, %s2035_s4 }
  0x79   : > { %1203 = vrot.lane.b32.xlu0 %v1645_v3, %s1471_s25 }
  0x7e   : > { %352 = vrot.lane.b32.xlu1 %v1652_v4, %s1466_s9  ;;  %1213 = vrot.lane.b32.xlu2 %v1645_v3, %s1472_s7  ;;  %s1378_s9 = scalar_lea.hbm %s1377_s12, 32 }
  0x7f   : > { %p1379_p1 = scmp.ne.s32.totalorder %s1377_s12, %s1378_s9 }
  0x81   : > { %622 = vrot.lane.b32.xlu0 %v1652_v4, %s1467_s27  ;;  %p1380_p4 = pnand %p1379_p1, %p1586_p5 }
  0x83   : > { %p1381_p8 = pneg %p1380_p4 }
  0x86   : > { %1218 = vrot.lane.b32.xlu1 %v1645_v3, %s1473_s8  ;;  %637 = vrot.lane.b32.xlu2 %v1652_v4, %s1469_s30  ;;  %s1382_s30 = scalar_lea.hbm %s2035_s4, 64 }
  0x87   : > { %p1384_p12 = scmp.lt.s32.totalorder %s1382_s30, %s1378_s9 }
  0x89   : > { %517 = vrot.lane.b32.xlu0 %v1652_v4, %s1468_s29  ;;  %p1385_p13 = por %p1384_p12, %p1383_p10 }
  0x8b   : > { %p1386_p0 = pnand %p1385_p13, %p1381_p8 }
  0x8e   : > { %1223 = vrot.lane.b32.xlu1 %v1645_v3, %s1474_s0  ;;  %532 = vrot.lane.b32.xlu2 %v1652_v4, %s1470_s10 }
  0x90   : > { %v597_v6 = vpop.permute.xlu2 %596 }
  0x91   : > { %370 = vrot.lane.b32.xlu0 %v1652_v4, %s1471_s25 }
  0x96   : > { %388 = vrot.lane.b32.xlu1 %v1652_v4, %s1472_s7  ;;  %1233 = vrot.lane.b32.xlu2 %v1645_v3, %s1475_s17 }
  0x98   : > { %v595_v8 = vpop.permute.xlu2 %594 }
  0x99   : > { %v599_v9 = vsel %vm598_vm0, %v595_v8, %v597_v6  ;;  %1228 = vrot.lane.b32.xlu0 %v1645_v3, %s1476_s19 }
  0x9a   : > { %v603_v14 = vrot.slane %v599_v9, 7 }
  0x9e   : > { %406 = vrot.lane.b32.xlu1 %v1652_v4, %s1474_s0  ;;  %1238 = vrot.lane.b32.xlu2 %v1645_v3, %s1477_s28 }
  0xa0   : > { %v1690_v10 = vpop.permute.xlu2 %611 }
  0xa1   : > { %547 = vrot.lane.b32.xlu0 %v1652_v4, %s1473_s8 }
  0xa6   : > { %424 = vrot.lane.b32.xlu1 %v1652_v4, %s1475_s17  ;;  %442 = vrot.lane.b32.xlu2 %v1652_v4, %s1477_s28 }
  0xa8   : > { %v582_v11 = vpop.permute.xlu1 %581  ;;  %v473_v12 = vpop.permute.xlu2 %472 }
  0xa9   : > { %562 = vrot.lane.b32.xlu0 %v1652_v4, %s1476_s19 }
  0xab   : > { %v1169_v13 = vpop.permute.xlu0 %1168 }
  0xac   : > { %v1171_v26 = vunpack.i.h.bf16 %v1169_v13  ;;  %v1170_v27 = vunpack.i.l.bf16 %v1169_v13 }
  0xae   : > { %v464_v32 = vsel %vm463_vm3, %v1170_v27, %v1171_v26 }
  0xaf   : > { %v468_v35 = vrot.slane %v464_v32, 7 }
  0xb0   : > { %v580_v15 = vpop.permute.xlu1 %579  ;;  %v593_v16 = vpop.permute.xlu2 %592 }
  0xb1   : > { %v600_v17 = vsel %vm598_vm0, %v593_v16, %v595_v8  ;;  %v584_v46 = vsel %vm583_vm10, %v580_v15, %v582_v11  ;;  %vm734_vm0 = vcmask 1041408  }
  0xb2   : > { %v604_v18 = vsel %vm328_vm1, %v600_v17, %v603_v14  ;;  %v588_v51 = vrot.slane %v584_v46, 7 }
  0xb3   : > { %v1174_v19 = vpop.permute.xlu0 %1173  ;;  %v606_v53 = vsel %vm1730_vm13, %v604_v18, 0.0 }
  0xb4   : > { %v1176_v20 = vunpack.i.h.bf16 %v1174_v19  ;;  %v1175_v21 = vunpack.i.l.bf16 %v1174_v19  ;;  %v772_v57 = vperm.slane %v606_v53, 0  ;;  %v773_v58 = vperm.slane %v606_v53, 1 }
  0xb6   : > { %v479_v22 = vsel %vm478_vm2, %v1175_v21, %v1176_v20  ;;  %v480_v23 = vsel %vm478_vm2, %v473_v12, %v1175_v21  ;;  %vm508_vm2 = vcmp.lt.s32.totalorder %v1680_v7, 108 }
  0xb7   : > { %v483_v24 = vrot.slane %v479_v22, 7 }
  0xb8   : > { %v1700_v25 = vpop.permute.xlu1 %609  ;;  %v1708_v30 = vpop.permute.xlu2 %1193 }
  0xb9   : > { %v484_v29 = vsel %vm328_vm1, %v480_v23, %v483_v24 }
  0xba   : > { %v486_v38 = vsel %vm1712_vm8, %v484_v29, 0.0 }
  0xbb   : > { %v1179_v31 = vpop.permute.xlu0 %1178  ;;  %v698_v44 = vperm.slane %v486_v38, 0  ;;  %v699_v45 = vperm.slane %v486_v38, 1  ;;  %v1195_v38 = vunpack.i.l.bf16 %v1708_v30 }
  0xbc   : > { %v1181_v5 = vunpack.i.h.bf16 %v1179_v31  ;;  %v1180_v6 = vunpack.i.l.bf16 %v1179_v31  ;;  %v327_v31 = vrot.slane %v1642_v2, 7 }
  0xbe   : > { %v494_v11 = vsel %vm493_vm14, %v1180_v6, %v1181_v5 }
  0xbf   : > { %v498_v12 = vrot.slane %v494_v11, 7 }
  0xc0   : > { %v458_v36 = vpop.permute.xlu1 %457  ;;  %v1734_v48 = vpop.permute.xlu2 %607 }
  0xc1   : > { %v465_v37 = vsel %vm463_vm3, %v458_v36, %v1170_v27  ;;  %vm324_vm3 = vcmp.ge.s32.totalorder %v1702_v28, 3 }
  0xc2   : > { %v469_v39 = vsel %vm328_vm1, %v465_v37, %v468_v35  ;;  %v1196_v37 = vunpack.i.h.bf16 %v1708_v30 }
  0xc3   : > { %v471_v40 = vsel %vm1716_vm9, %v469_v39, 0.0  ;;  %v1184_v43 = vpop.permute.xlu0 %1183 }
  0xc4   : > { %v693_v41 = vperm.slane %v471_v40, 0  ;;  %v694_v42 = vperm.slane %v471_v40, 1  ;;  %v1186_v16 = vunpack.i.h.bf16 %v1184_v43  ;;  %v1185_v17 = vunpack.i.l.bf16 %v1184_v43 }
  0xc5   : > { %v329_v40 = vsel %vm328_vm1, %v1652_v4, %v327_v31 }
  0xc6   : > { %v752_v49 = vsel %vm328_vm1, %v693_v41, %v698_v44  ;;  %v753_v50 = vsel %vm328_vm1, %v694_v42, %v699_v45  ;;  %v341_v29 = vsel %vm340_vm15, %v1185_v17, %v1186_v16  ;;  %v614_v41 = vsel %vm613_vm5, %v1700_v25, %v1690_v10 }
  0xc7   : > { %v348_v36 = vrot.slane %v341_v29, 7  ;;  %v618_v46 = vrot.slane %v614_v41, 7 }
  0xc8   : > { %v578_v52 = vpop.permute.xlu1 %577  ;;  %v333_v0 = vpop.permute.xlu2 %332 }
  0xc9   : > { %v585_v54 = vsel %vm583_vm10, %v578_v52, %v580_v15  ;;  %v342_v2 = vsel %vm340_vm15, %v333_v0, %v1185_v17  ;;  %vm1783_vm10 = vmand %vm324_vm3, %vm325_vm4  ;;  %vm737_vm15 = vcmask 1042432   ;;  %vm433_vm3 = vcmp.ge.s32.totalorder %v1702_v28, 4294967293 }
  0xca   : > { %v589_v55 = vsel %vm328_vm1, %v585_v54, %v588_v51  ;;  %v349_v4 = vsel %vm328_vm1, %v342_v2, %v348_v36  ;;  %v331_v10 = vsel %vm1783_vm10, %v329_v40, 0.0  ;;  %v615_v51 = vsel %vm613_vm5, %v1734_v48, %v1700_v25 }
  0xcb   : > { %v591_v56 = vsel %vm1712_vm8, %v589_v55, 0.0  ;;  %v1189_v61 = vpop.permute.xlu0 %1188  ;;  %v619_v25 = vsel %vm328_vm1, %v615_v51, %v618_v46  ;;  %v654_v0 = vperm.slane %v331_v10, 1  ;;  %vm434_vm4 = vcmp.lt.s32.totalorder %v1702_v28, 13 }
  0xcc   : > { %v767_v59 = vperm.slane %v591_v56, 0  ;;  %v768_v60 = vperm.slane %v591_v56, 1  ;;  %v1191_v22 = vunpack.i.h.bf16 %v1189_v61  ;;  %v1190_v23 = vunpack.i.l.bf16 %v1189_v61 }
  0xcd   : > { %vm415_vm5 = vcmp.ge.s32.totalorder %v1702_v28, 4294967294 }
  0xce   : > { %v1746_v62 = vsel %vm328_vm1, %v767_v59, %v772_v57  ;;  %v1749_v63 = vsel %vm328_vm1, %v768_v60, %v773_v58  ;;  %v509_v35 = vsel %vm508_vm2, %v1190_v23, %v1191_v22  ;;  %v351_v57 = vsel %vm1716_vm9, %v349_v4, 0.0 }
  0xcf   : > { %v513_v42 = vrot.slane %v509_v35, 7  ;;  %v653_v58 = vperm.slane %v331_v10, 0  ;;  %v658_v5 = vperm.slane %v351_v57, 0 }
  0xd0   : > { %v1751_v1 = vpop.permute.xlu1 %626  ;;  %v1756_v8 = vpop.permute.xlu2 %1208 }
  0xd1   : > { %v732_v29 = vsel %vm328_vm1, %v653_v58, %v658_v5 }
  0xd3   : > { %v1753_v3 = vpop.permute.xlu0 %624 }
  0xd8   : > { %v1758_v9 = vpop.permute.xlu1 %1198  ;;  %v1766_v27 = vpop.permute.xlu2 %1213 }
  0xd9   : > { %v1215_v5 = vunpack.i.l.bf16 %v1766_v27 }
  0xdb   : > { %v488_v13 = vpop.permute.xlu0 %487 }
  0xdc   : > { %v495_v14 = vsel %vm493_vm14, %v488_v13, %v1180_v6  ;;  %vm1797_vm14 = vmand %vm397_vm6, %vm398_vm7  ;;  %v659_v6 = vperm.slane %v351_v57, 1  ;;  %vm416_vm6 = vcmp.lt.s32.totalorder %v1702_v28, 14 }
  0xdd   : > { %v499_v15 = vsel %vm328_vm1, %v495_v14, %v498_v12  ;;  %v621_v14 = vsel %vm1797_vm14, %v619_v25, 0.0  ;;  %vm1842_vm7 = vmand %vm433_vm3, %vm434_vm4  ;;  %vm523_vm3 = vcmp.lt.s32.totalorder %v1680_v7, 107  ;;  %vm394_vm4 = vcmp.lt.s32.totalorder %v1680_v7, 124 }
  0xde   : > { %v501_v18 = vsel %vm1730_vm13, %v499_v15, 0.0  ;;  %v733_v31 = vsel %vm328_vm1, %v654_v0, %v659_v6  ;;  %v1216_v0 = vunpack.i.h.bf16 %v1766_v27 }
  0xdf   : > { %v703_v19 = vperm.slane %v501_v18, 0  ;;  %v704_v20 = vperm.slane %v501_v18, 1 }
  0xe0   : > { %v642_v21 = vpop.permute.xlu1 %641  ;;  %v638_v53 = vpop.permute.xlu2 %637 }
  0xe1   : > { %v754_v24 = vsel %vm734_vm0, %v752_v49, %v703_v19  ;;  %v755_v26 = vsel %vm734_vm0, %v753_v50, %v704_v20  ;;  %v359_v50 = vsel %vm358_vm11, %v1195_v38, %v1196_v37  ;;  %v778_v37 = vperm.slane %v621_v14, 1 }
  0xe2   : > { %v366_v61 = vrot.slane %v359_v50, 7 }
  0xe3   : > { %v640_v32 = vpop.permute.xlu0 %639 }
  0xe4   : > { %v644_v52 = vsel %vm643_vm12, %v640_v32, %v642_v21  ;;  %v645_v15 = vsel %vm643_vm12, %v638_v53, %v640_v32  ;;  %vm743_vm12 = vcmask 1044480   ;;  %v1210_v53 = vunpack.i.l.bf16 %v1756_v8 }
  0xe5   : > { %v648_v48 = vrot.slane %v644_v52, 7  ;;  %v1211_v52 = vunpack.i.h.bf16 %v1756_v8 }
  0xe8   : > { %v503_v43 = vpop.permute.xlu1 %502  ;;  %v533_v20 = vpop.permute.xlu2 %532 }
  0xe9   : > { %v510_v30 = vsel %vm508_vm2, %v503_v43, %v1190_v23  ;;  %vm628_vm2 = vcmp.lt.s32.totalorder %v1680_v7, 91 }
  0xea   : > { %v514_v45 = vsel %vm328_vm1, %v510_v30, %v513_v42  ;;  %v629_v12 = vsel %vm628_vm2, %v1753_v3, %v1751_v1  ;;  %v649_v1 = vsel %vm328_vm1, %v645_v15, %v648_v48  ;;  %v794_v30 = vsel %vm734_vm0, %v1749_v63, %v778_v37 }
  0xeb   : > { %v516_v49 = vsel %vm1797_vm14, %v514_v45, 0.0  ;;  %v1815_v56 = vpop.permute.xlu0 %1203  ;;  %v633_v19 = vrot.slane %v629_v12, 7  ;;  %v651_v33 = vsel %vm1842_vm7, %v649_v1, 0.0 }
  0xec   : > { %v708_v54 = vperm.slane %v516_v49, 0  ;;  %v709_v55 = vperm.slane %v516_v49, 1  ;;  %v787_v42 = vperm.slane %v651_v33, 0  ;;  %v788_v43 = vperm.slane %v651_v33, 1 }
  0xee   : > { %v1821_v59 = vsel %vm737_vm15, %v754_v24, %v708_v54  ;;  %v1824_v60 = vsel %vm737_vm15, %v755_v26, %v709_v55  ;;  %v777_v24 = vperm.slane %v621_v14, 0  ;;  %v1201_v54 = vunpack.i.h.bf16 %v1758_v9 }
  0xef   : > { %v1200_v55 = vunpack.i.l.bf16 %v1758_v9  ;;  %v1206_v9 = vunpack.i.h.bf16 %v1815_v56 }
  0xf0   : > { %v353_v11 = vpop.permute.xlu1 %352  ;;  %v793_v41 = vsel %vm734_vm0, %v1746_v62, %v777_v24  ;;  %v1881_v51 = vpop.permute.xlu2 %1233 }
  0xf1   : > { %v360_v13 = vsel %vm358_vm11, %v353_v11, %v1195_v38  ;;  %vm1849_vm11 = vmand %vm415_vm5, %vm416_vm6  ;;  %v524_v48 = vsel %vm523_vm3, %v1200_v55, %v1201_v54  ;;  %vm376_vm5 = vcmp.lt.s32.totalorder %v1680_v7, 125  ;;  %vm448_vm6 = vcmp.lt.s32.totalorder %v1680_v7, 112 }
  0xf2   : > { %v367_v16 = vsel %vm328_vm1, %v360_v13, %v366_v61  ;;  %v528_v12 = vrot.slane %v524_v48, 7  ;;  %v1205_v13 = vunpack.i.l.bf16 %v1815_v56  ;;  %v395_v56 = vsel %vm394_vm4, %v1215_v5, %v1216_v0 }
  0xf3   : > { %v369_v18 = vsel %vm1712_vm8, %v367_v16, 0.0  ;;  %v623_v23 = vpop.permute.xlu0 %622  ;;  %vm740_vm8 = vcmask 1043456   ;;  %v1235_v24 = vunpack.i.l.bf16 %v1881_v51  ;;  %v402_v37 = vrot.slane %v395_v56, 7 }
  0xf4   : > { %v663_v28 = vperm.slane %v369_v18, 0  ;;  %v664_v21 = vperm.slane %v369_v18, 1  ;;  %v630_v26 = vsel %vm628_vm2, %v623_v23, %v1753_v3  ;;  %vm2039_vm2 = vcmask 1045504  }
  0xf5   : > { %v634_v32 = vsel %vm328_vm1, %v630_v26, %v633_v19  ;;  %v1236_v23 = vunpack.i.h.bf16 %v1881_v51 }
  0xf6   : > { %v1862_v35 = vsel %vm734_vm0, %v732_v29, %v663_v28  ;;  %v1865_v36 = vsel %vm734_vm0, %v733_v31, %v664_v21  ;;  %v636_v38 = vsel %vm1849_vm11, %v634_v32, 0.0  ;;  %vm538_vm0 = vcmp.lt.s32.totalorder %v1680_v7, 106 }
  0xf7   : > { %v782_v3 = vperm.slane %v636_v38, 0  ;;  %v783_v2 = vperm.slane %v636_v38, 1  ;;  %v539_v58 = vsel %vm538_vm0, %v1210_v53, %v1211_v52  ;;  %v540_v11 = vsel %vm538_vm0, %v533_v20, %v1210_v53 }
  0xf8   : > { %v1869_v40 = vpop.permute.xlu1 %1218  ;;  %v1239_v25 = vpop.permute.xlu2 %1238  ;;  %v543_v6 = vrot.slane %v539_v58, 7  ;;  %vm412_vm0 = vcmp.lt.s32.totalorder %v1680_v7, 123  ;;  %v377_v21 = vsel %vm376_vm5, %v1205_v13, %v1206_v9 }
  0xf9   : > { %v795_v4 = vsel %vm737_vm15, %v793_v41, %v782_v3  ;;  %v796_v45 = vsel %vm737_vm15, %v794_v30, %v783_v2  ;;  %v1241_v14 = vunpack.i.h.bf16 %v1239_v25  ;;  %v1240_v15 = vunpack.i.l.bf16 %v1239_v25 }
  0xfa   : > { %v797_v10 = vsel %vm740_vm8, %v795_v4, %v787_v42  ;;  %v798_v46 = vsel %vm740_vm8, %v796_v45, %v788_v43  ;;  %v1221_v16 = vunpack.i.h.bf16 %v1869_v40  ;;  %v1220_v27 = vunpack.i.l.bf16 %v1869_v40 }
  0xfb   : > { %v518_v49 = vpop.permute.xlu0 %517  ;;  %v799_v50 = vsel %vm743_vm12, %v797_v10, 1.0  ;;  %v800_v62 = vsel %vm743_vm12, %v798_v46, 1.0  ;;  %v544_v28 = vsel %vm328_vm1, %v540_v11, %v543_v6  ;;  %v449_v26 = vsel %vm448_vm6, %v1240_v15, %v1241_v14 }
  0xfc   : > { %1037 = vmatpush.msk.msra.mxu0 %vm2039_vm2, %v799_v50  ;;  %1049 = vmatpush.msk.msra.mxu2 %vm2039_vm2, %v799_v50  ;;  %v525_v8 = vsel %vm523_vm3, %v518_v49, %v1200_v55  ;;  %vm553_vm3 = vcmp.lt.s32.totalorder %v1680_v7, 96  ;;  %v546_v2 = vsel %vm1842_vm7, %v544_v28, 0.0  ;;  %v384_v40 = vrot.slane %v377_v21, 7 }
  0xfd   : > { %1040 = vmatpush.msk.msra.mxu1 %vm2039_vm2, %v800_v62  ;;  %1052 = vmatpush.msk.msra.mxu3 %vm2039_vm2, %v800_v62  ;;  %v529_v18 = vsel %vm328_vm1, %v525_v8, %v528_v12  ;;  %vm430_vm2 = vcmp.lt.s32.totalorder %v1680_v7, 122  ;;  %v554_v3 = vsel %vm553_vm3, %v1220_v27, %v1221_v16  ;;  %v453_v42 = vrot.slane %v449_v26, 7 }
  0xfe   : > { %v531_v29 = vsel %vm1849_vm11, %v529_v18, 0.0  ;;  %v431_v45 = vsel %vm430_vm2, %v1235_v24, %v1236_v23  ;;  %v558_v62 = vrot.slane %v554_v3, 7 }
  0xff   : > { %v713_v43 = vperm.slane %v531_v29, 0  ;;  %v714_v10 = vperm.slane %v531_v29, 1 }
 0x100   : > { %v1224_v63 = vpop.permute.xlu1 %1223  ;;  %v443_v33 = vpop.permute.xlu2 %442 }
 0x101   : > { %v1226_v19 = vunpack.i.h.bf16 %v1224_v63  ;;  %v1225_v20 = vunpack.i.l.bf16 %v1224_v63  ;;  %v450_v4 = vsel %vm448_vm6, %v443_v33, %v1240_v15  ;;  %v758_v48 = vsel %vm740_vm8, %v1821_v59, %v713_v43 }
 0x102   : > { %v454_v55 = vsel %vm328_vm1, %v450_v4, %v453_v42  ;;  %v759_v11 = vsel %vm740_vm8, %v1824_v60, %v714_v10 }
 0x103   : > { %v371_v57 = vpop.permute.xlu0 %370  ;;  %v413_v38 = vsel %vm412_vm0, %v1225_v20, %v1226_v19  ;;  %v456_v47 = vsel %vm1783_vm10, %v454_v55, 0.0 }
 0x104   : > { %v378_v32 = vsel %vm376_vm5, %v371_v57, %v1205_v13  ;;  %v420_v49 = vrot.slane %v413_v38, 7  ;;  %v718_v57 = vperm.slane %v546_v2, 0  ;;  %v688_v26 = vperm.slane %v456_v47, 0 }
 0x105   : > { %v385_v46 = vsel %vm328_vm1, %v378_v32, %v384_v40  ;;  %v689_v33 = vperm.slane %v456_v47, 1 }
 0x106   : > { %v387_v58 = vsel %vm1730_vm13, %v385_v46, 0.0  ;;  %vm749_vm13 = vcmask 1046528   ;;  %v760_v60 = vsel %vm743_vm12, %v758_v48, %v718_v57 }
 0x107   : > { %v668_v44 = vperm.slane %v387_v58, 0  ;;  %v669_v22 = vperm.slane %v387_v58, 1 }
 0x108   : > { %v389_v61 = vpop.permute.xlu1 %388 }
 0x109   : > { %v396_v41 = vsel %vm394_vm4, %v389_v61, %v1215_v5  ;;  %vm568_vm4 = vcmp.lt.s32.totalorder %v1680_v7, 95  ;;  %v719_v61 = vperm.slane %v546_v2, 1  ;;  %v438_v5 = vrot.slane %v431_v45, 7  ;;  %v801_v45 = vld [vmem:[#allocation2] sm:$0xff] }
 0x10a   : > { %v403_v51 = vsel %vm328_vm1, %v396_v41, %v402_v37  ;;  %v738_v17 = vsel %vm737_vm15, %v1862_v35, %v668_v44  ;;  %v739_v32 = vsel %vm737_vm15, %v1865_v36, %v669_v22  ;;  %vm803_vm15 = vcmask 179200  }
 0x10b   : > { %v1900_v1 = vpop.permute.xlu0 %1228  ;;  %v405_v0 = vsel %vm1797_vm14, %v403_v51, 0.0  ;;  %v761_v16 = vsel %vm743_vm12, %v759_v11, %v719_v61 }
 0x10c   : > { %v1231_v63 = vunpack.i.h.bf16 %v1900_v1  ;;  %v1230_v52 = vunpack.i.l.bf16 %v1900_v1  ;;  %v673_v14 = vperm.slane %v405_v0, 0  ;;  %v674_v1 = vperm.slane %v405_v0, 1 }
 0x10e   : > { %v569_v59 = vsel %vm568_vm4, %v1230_v52, %v1231_v63  ;;  %v742_v3 = vsel %vm740_vm8, %v739_v32, %v674_v1 }
 0x110   : > { %v407_v31 = vpop.permute.xlu1 %406 }
 0x111   : > { %v414_v30 = vsel %vm412_vm0, %v407_v31, %v1225_v20  ;;  %v573_v20 = vrot.slane %v569_v59, 7  ;;  %v741_v31 = vsel %vm740_vm8, %v738_v17, %v673_v14 }
 0x112   : > { %v421_v54 = vsel %vm328_vm1, %v414_v30, %v420_v49  ;;  %v802_v30 = vld [vmem:[#allocation2 + $0x8] sm:$0xff] }
 0x113   : > { %v548_v50 = vpop.permute.xlu0 %547  ;;  %v423_v8 = vsel %vm1849_vm11, %v421_v54, 0.0 }
 0x114   : > { %v555_v53 = vsel %vm553_vm3, %v548_v50, %v1220_v27  ;;  %v678_v27 = vperm.slane %v423_v8, 0  ;;  %v679_v18 = vperm.slane %v423_v8, 1 }
 0x115   : > { %v559_v25 = vsel %vm328_vm1, %v555_v53, %v558_v62 }
 0x116   : > { %v561_v9 = vsel %vm1783_vm10, %v559_v25, 0.0  ;;  %v744_v7 = vsel %vm743_vm12, %v741_v31, %v678_v27  ;;  %v745_v34 = vsel %vm743_vm12, %v742_v3, %v679_v18 }
 0x117   : > { %v723_v28 = vperm.slane %v561_v9, 0  ;;  %v724_v56 = vperm.slane %v561_v9, 1 }
 0x118   : > { %v425_v6 = vpop.permute.xlu1 %424 }
 0x119   : > { %v432_v12 = vsel %vm430_vm2, %v425_v6, %v1235_v24 }
 0x11a   : > { %v439_v13 = vsel %vm328_vm1, %v432_v12, %v438_v5 }
 0x11b   : > { %v441_v15 = vsel %vm1842_vm7, %v439_v13, 0.0  ;;  %v563_v19 = vpop.permute.xlu0 %562 }
 0x11c   : > { %v683_v39 = vperm.slane %v441_v15, 0  ;;  %v570_v21 = vsel %vm568_vm4, %v563_v19, %v1230_v52  ;;  %v684_v23 = vperm.slane %v441_v15, 1 }
 0x11d   : > { %v574_v24 = vsel %vm328_vm1, %v570_v21, %v573_v20  ;;  %vm2069_vm1 = vcmask 1045504  }
 0x11e   : > { %v576_v29 = vsel %vm1716_vm9, %v574_v24, 0.0  ;;  %v762_v2 = vsel %vm2069_vm1, %v760_v60, %v723_v28  ;;  %vm2070_vm10 = vmmov %vm2069_vm1 }
 0x11f   : > { %v728_v37 = vperm.slane %v576_v29, 0  ;;  %v729_v38 = vperm.slane %v576_v29, 1  ;;  %v763_v40 = vsel %vm2070_vm10, %v761_v16, %v724_v56  ;;  %vm2071_vm14 = vmmov %vm2069_vm1 }
 0x120   : > { %v747_v35 = vsel %vm2071_vm14, %v744_v7, %v683_v39  ;;  %vm2072_vm9 = vmmov %vm2069_vm1 }
 0x121   : > { %v764_v41 = vsel %vm749_vm13, %v762_v2, %v728_v37  ;;  %v765_v42 = vsel %vm749_vm13, %v763_v40, %v729_v38  ;;  %v748_v36 = vsel %vm2072_vm9, %v745_v34, %v684_v23  ;;  %v750_v43 = vsel %vm749_vm13, %v747_v35, %v688_v26 }
 0x122   : > { %830 = vmatpush.msra.mxu0 %v764_v41  ;;  %1050 = vmatpush.msra.mxu2 %v764_v41  ;;  %v751_v4 = vsel %vm749_vm13, %v748_v36, %v689_v33 }
 0x123   : > { %853 = vmatpush.msra.mxu1 %v765_v42  ;;  %1053 = vmatpush.msra.mxu3 %v765_v42 }
 0x124   : > { %831 = vmatpush.msra.mxu0 %v750_v43  ;;  %1051 = vmatpush.msra.mxu2 %v750_v43 }
 0x125   : > { %854 = vmatpush.msra.mxu1 %v751_v4  ;;  %1054 = vmatpush.msra.mxu3 %v751_v4 }
 0x126   : > { %1039 = vmatmul.msk.f32.vlgmr.msra.gmra.mxu2 %vm803_vm15, %v802_v30  ;;  %1042 = vmatmul.msk.f32.vlgmr.msra.gmra.mxu3 %vm803_vm15, %v802_v30 }
 0x127   : > { %1038 = vmatmul.msk.f32.vlgmr.msra.gmra.mxu0 %vm803_vm15, %v801_v45  ;;  %1041 = vmatmul.msk.f32.vlgmr.msra.gmra.mxu1 %vm803_vm15, %v801_v45 }
 0x1a4   : > { %v833_v10 = vpop.f32.mrf.mxu0  ;;  %v856_v46 = vpop.f32.mrf.mxu1 }
 0x1a5   : > { %vm862_vm7 = vcmp.ge.f32.partialorder %v833_v10, 0.0  ;;  %v866_v49 = vmul.f32 0.2, %v833_v10  ;;  %vm863_vm11 = vcmp.ge.f32.partialorder %v856_v46, 0.0  ;;  %v867_v50 = vmul.f32 0.2, %v856_v46 }
 0x1a7   : > { %v870_v62 = vsel %vm862_vm7, %v833_v10, %v866_v49  ;;  %v871_v51 = vsel %vm863_vm11, %v856_v46, %v867_v50 }
 0x1a8   : > { %874 = vst [vmem:[%s310_s22] sm:$0xff] %v870_v62 }
 0x1a9   : > { %875 = vst [vmem:[%s310_s22 + $0x8] sm:$0xff] %v871_v51  ;;  %v836_v63 = vpop.f32.mrf.mxu2  ;;  %v859_v52 = vpop.f32.mrf.mxu3 }
 0x1aa   : > { %vm864_vm8 = vcmp.ge.f32.partialorder %v836_v63, 0.0  ;;  %v868_v53 = vmul.f32 0.2, %v836_v63  ;;  %vm865_vm12 = vcmp.ge.f32.partialorder %v859_v52, 0.0  ;;  %v869_v54 = vmul.f32 0.2, %v859_v52 }
 0x1ac   : > { %v872_v55 = vsel %vm864_vm8, %v836_v63, %v868_v53  ;;  %v873_v57 = vsel %vm865_vm12, %v859_v52, %v869_v54 }
 0x1ad   : > { %876 = vst [vmem:[%s310_s22 + $0x10] sm:$0xff] %v872_v55 }
 0x1ae   : > { %877 = vst [vmem:[%s310_s22 + $0x18] sm:$0xff] %v873_v57 }
 0x1af   : > { %1389 = shalt.err (!%p1386_p0)
}
 0x1b0   : > { %s1478_s2 = smov 256   ;;  %s1479_s7 = smov 16  }
 0x1b1   : > { %1067 = dma.vmem_to_hbm [thread:$0]  (%p1586_p5), %s1994_s26, 512, %s896_s6, %s879_s18, %s1478_s2, %s1478_s2, %s1479_s7  }
 0x1b2 PF: > { %s910_s8 = sand.u32 1, %s1432_s15   ;;  %p1084_p3 = pnand %p1028_p11, %p1550_p6 }
 0x1b3   : > { %s911_s0 = scalar_lea.sflag [#allocation4], %s910_s8 }
 0x1b4   : > { %p1085_p7 = pneg %p1084_p3 }
 0x1b6   : > { %1427 = dma.done.wait (%p1085_p7), %s911_s0, 512  }
 0x1b7   : > { %1429 = vsyncadd (%p1085_p7), %s911_s0, 4294966784  ;;  %s19_s20 = sadd.s32 1, %s1452_s20   ;;  %s2073_s17 = sld [smem:[#allocation14_spill]] }
 0x1b8   : > { %p16_p9 = scmp.ge.s32.totalorder %s19_s20, 4   ;;  %s2074_s19 = sld [smem:[#allocation17_spill]] }
 0x1b9   : > { %s2075_s18 = sld [smem:[#allocation15_spill]]  ;;  %s2077_s15 = smov %s1436_s16 }
 0x1ba   : > { %s2076_s11 = sld [smem:[#allocation16_spill]] }
 0x1bc   :  { %18 = sbr.rel (!%p16_p9) target bundleno = 9 (0x9), region = 100 }
 0x1bd   : > { %s2078_s16 = smov %s2073_s17 }
 0x1be   : > { %s2079_s17 = smov %s2074_s19 }
 0x1c0   : > { %s2080_s19 = smov %s2076_s11 }
 0x1c1   :  { %917 = vsyncpa [#allocation3], 1 }
 0x1c2   :  { %919 = vsyncpa [#allocation3 + $0x1], 1 }
 0x1c3   :  { %920 = vsyncpa [#allocation6], 1 }
 0x1c4   :  { %921 = vsyncpa [#allocation4], 1 }
 0x1c5   :  { %923 = vsyncpa [#allocation4 + $0x1], 1 }

</bundles_post_ra>
